<compile_context>
chip_gen: v5e
topology: v5e:2x2
jax: 0.10.0
libtpu: 0.0.40
codegen_flags: <defaults>
</compile_context>

<pallas_src>
import jax
import jax.numpy as jnp
from jax.experimental import pallas as pl
from jax.experimental.pallas import tpu as pltpu


_MIN_SPLIT = 1024  # only split the batch across >=2 grid steps above this many rows
_LANE = 128


def mlp_kernel(x_ref,
               w1_ref, b1_ref,
               w2_ref, b2_ref,
               w3_ref, b3_ref,
               w4_ref, b4_ref,
               o_ref):
    """Full 4-layer MLP on one batch tile. Weights are (in, out) — no transposes."""
    x = x_ref[...]                                                      # (tile_n, D_in)

    h = jnp.dot(x, w1_ref[...], preferred_element_type=jnp.float32) + b1_ref[...]
    h = jnp.maximum(h, 0.0)

    h = jnp.dot(h, w2_ref[...], preferred_element_type=jnp.float32) + b2_ref[...]
    h = jnp.maximum(h, 0.0)

    h = jnp.dot(h, w3_ref[...], preferred_element_type=jnp.float32) + b3_ref[...]
    h = jnp.maximum(h, 0.0)

    out = jnp.dot(h, w4_ref[...], preferred_element_type=jnp.float32) + b4_ref[...]
    o_ref[...] = out.astype(o_ref.dtype)


def _round_up(x, m):
    return ((x + m - 1) // m) * m


def _choose_tile(n, block_n):
    """Pick the batch tile: big (amortize DMA/step overhead), multiple of 8, and
    guaranteeing >=2 grid steps for large batches (v7x megacore)."""
    if n <= block_n:
        if n >= 2 * _MIN_SPLIT:
            # Split into (at least) 2 steps so both v7x TensorCores get work.
            return _round_up(-(-n // 2), 8)
        return n                      # single step; tile == full batch dim is legal
    return _round_up(block_n, 8)


def _vmem_limit_bytes(tile_n):
    """Estimate lane-padded VMEM footprint and return a scoped limit with headroom,
    clamped below v7x's 64 MiB physical VMEM."""
    bytes_per_row = 4 * _LANE          # every feature dim (8/16/2) pads to 128 lanes, f32
    # x (double-buffered) + out (double-buffered) + ~3 live intermediate activations
    act = tile_n * bytes_per_row * (2 + 2 + 3)
    params = 4 * (_LANE * _LANE * 4 + _LANE * 4)   # generous: 4 lane-padded (128,128) weights
    est = act + params
    return int(min(max(32 << 20, int(est * 1.5)), 56 << 20))


def mlp_predictor_forward(x, params, block_n=4096):
    """x: (N, L, F) float32. params: dict of (w, b) per layer in PyTorch layout."""
    N = x.shape[0]
    x_flat = x.reshape(N, -1)                                           # nn.Flatten(1, -1)
    d_in = x_flat.shape[1]

    w1, b1 = params["fc1"]
    w2, b2 = params["fc2"]
    w3, b3 = params["fc3"]
    w4, b4 = params["fc4"]
    out_dim = w4.shape[0]

    # Pre-transpose weights once in the wrapper: (out, in) -> (in, out).
    w1t, w2t, w3t, w4t = (w.T for w in (w1, w2, w3, w4))
    # Biases as (1, H) rows; broadcast over the batch tile inside the kernel.
    b1r, b2r, b3r, b4r = (b.reshape(1, -1) for b in (b1, b2, b3, b4))

    tile_n = _choose_tile(N, block_n)
    grid = (pl.cdiv(N, tile_n),)        # last block may overhang; writes are masked

    tiled = lambda shape: pl.BlockSpec(shape, lambda i: (0, 0))         # resident params
    x_spec = pl.BlockSpec((tile_n, d_in), lambda i: (i, 0))
    o_spec = pl.BlockSpec((tile_n, out_dim), lambda i: (i, 0))

    out = pl.pallas_call(
        mlp_kernel,
        out_shape=jax.ShapeDtypeStruct((N, out_dim), jnp.float32),
        grid_spec=pltpu.PrefetchScalarGridSpec(
            num_scalar_prefetch=0,
            grid=grid,
            in_specs=[
                x_spec,
                tiled(w1t.shape), tiled(b1r.shape),
                tiled(w2t.shape), tiled(b2r.shape),
                tiled(w3t.shape), tiled(b3r.shape),
                tiled(w4t.shape), tiled(b4r.shape),
            ],
            out_specs=o_spec,
        ),
        compiler_params=pltpu.CompilerParams(
            dimension_semantics=("parallel",),
            vmem_limit_bytes=_vmem_limit_bytes(tile_n),
        ),
    )(x_flat, w1t, b1r, w2t, b2r, w3t, b3r, w4t, b4r)

    return out


def init_params(key, in_dim, out_dim, hidden1=16, hidden2=16, hidden3=16):
    """Deterministic init mimicking nn.Linear default (uniform +/- 1/sqrt(fan_in))."""
    dims = [(in_dim, hidden1), (hidden1, hidden2), (hidden2, hidden3), (hidden3, out_dim)]
    names = ["fc1", "fc2", "fc3", "fc4"]
    params = {}
    for name, (fan_in, fan_out) in zip(names, dims):
        key, kw, kb = jax.random.split(key, 3)
        bound = 1.0 / (fan_in ** 0.5)
        w = jax.random.uniform(kw, (fan_out, fan_in), jnp.float32, -bound, bound)
        b = jax.random.uniform(kb, (fan_out,), jnp.float32, -bound, bound)
        params[name] = (w, b)
    return params


def reference_forward(x, params):
    """Pure-JAX reference for the same forward pass (PyTorch Linear semantics)."""
    h = x.reshape(x.shape[0], -1)
    for name in ["fc1", "fc2", "fc3"]:
        w, b = params[name]
        h = jnp.maximum(h @ w.T + b, 0.0)
    w, b = params["fc4"]
    return h @ w.T + b


if __name__ == "__main__":
    key = jax.random.PRNGKey(0)
    key, kx, kx2 = jax.random.split(key, 3)

    # Input organized as (N, L, feature_in): batch=8, seq=4, feature=2.
    # Flattened size L*F = 8 is the in_features of fc1 (matches the module's Flatten path).
    N, L, F = 8, 4, 2
    out_dim = 2
    x = jax.random.normal(kx, (N, L, F), dtype=jnp.float32)

    params = init_params(key, in_dim=L * F, out_dim=out_dim)

    out = mlp_predictor_forward(x, params)
    out = jax.block_until_ready(out)

    ref = reference_forward(x, params)
    assert out.shape == (N, out_dim), out.shape
    assert jnp.allclose(out, ref, atol=1e-5, rtol=1e-5), (out, ref)

    # Second check: multi-step grid with an overhanging last block (N not a multiple
    # of tile_n) exercises the no-pad / masked-writeback path.
    N2 = 300
    x2 = jax.random.normal(kx2, (N2, L, F), dtype=jnp.float32)
    out2 = jax.block_until_ready(mlp_predictor_forward(x2, params, block_n=128))
    ref2 = reference_forward(x2, params)
    assert out2.shape == (N2, out_dim), out2.shape
    assert jnp.allclose(out2, ref2, atol=1e-5, rtol=1e-5)

    print("KERNEL_OK")
</pallas_src>

<mosaic_0001>
module attributes {stable_mosaic.version = 11 : i64} {
  func.func @mlp_kernel(%arg0: i32, %arg1: memref<8x8xf32, #tpu.memory_space<vmem>>, %arg2: memref<8x16xf32, #tpu.memory_space<vmem>>, %arg3: memref<1x16xf32, #tpu.memory_space<vmem>>, %arg4: memref<16x16xf32, #tpu.memory_space<vmem>>, %arg5: memref<1x16xf32, #tpu.memory_space<vmem>>, %arg6: memref<16x16xf32, #tpu.memory_space<vmem>>, %arg7: memref<1x16xf32, #tpu.memory_space<vmem>>, %arg8: memref<16x2xf32, #tpu.memory_space<vmem>>, %arg9: memref<1x2xf32, #tpu.memory_space<vmem>>, %arg10: memref<8x2xf32, #tpu.memory_space<vmem>>) attributes {dimension_semantics = [#tpu.dimension_semantics<parallel>], iteration_bounds = array<i64: 1>, scalar_prefetch = 0 : i64, scratch_operands = 0 : i64, tpu.core_type = #tpu.core_type<tc>, window_params = [{transform_indices = @transform_0, window_bounds = array<i64: 8, 8>}, {pipeline_mode = #tpu.pipeline_mode<synchronous>, transform_indices = @transform_1, window_bounds = array<i64: 8, 16>}, {pipeline_mode = #tpu.pipeline_mode<synchronous>, transform_indices = @transform_2, window_bounds = array<i64: 1, 16>}, {pipeline_mode = #tpu.pipeline_mode<synchronous>, transform_indices = @transform_3, window_bounds = array<i64: 16, 16>}, {pipeline_mode = #tpu.pipeline_mode<synchronous>, transform_indices = @transform_4, window_bounds = array<i64: 1, 16>}, {pipeline_mode = #tpu.pipeline_mode<synchronous>, transform_indices = @transform_5, window_bounds = array<i64: 16, 16>}, {pipeline_mode = #tpu.pipeline_mode<synchronous>, transform_indices = @transform_6, window_bounds = array<i64: 1, 16>}, {pipeline_mode = #tpu.pipeline_mode<synchronous>, transform_indices = @transform_7, window_bounds = array<i64: 16, 2>}, {pipeline_mode = #tpu.pipeline_mode<synchronous>, transform_indices = @transform_8, window_bounds = array<i64: 1, 2>}, {transform_indices = @transform_9, window_bounds = array<i64: 8, 2>}]} {
    %c0 = arith.constant 0 : index
    %c0_0 = arith.constant 0 : index
    %0 = vector.load %arg1[%c0, %c0_0] : memref<8x8xf32, #tpu.memory_space<vmem>>, vector<8x8xf32>
    %c0_1 = arith.constant 0 : index
    %c0_2 = arith.constant 0 : index
    %1 = vector.load %arg2[%c0_1, %c0_2] : memref<8x16xf32, #tpu.memory_space<vmem>>, vector<8x16xf32>
    %cst = arith.constant dense<0.000000e+00> : vector<8x16xf32>
    %2 = tpu.matmul %0, %1, %cst {dimension_numbers = #tpu.dot_dimension_numbers<[1], [0], [0], [1], [0, 0, 1, 1], [], []>} : vector<8x8xf32>, vector<8x16xf32>, vector<8x16xf32> -> vector<8x16xf32>
    %c0_3 = arith.constant 0 : index
    %c0_4 = arith.constant 0 : index
    %3 = vector.load %arg3[%c0_3, %c0_4] : memref<1x16xf32, #tpu.memory_space<vmem>>, vector<1x16xf32>
    %4 = vector.broadcast %3 : vector<1x16xf32> to vector<8x16xf32>
    %5 = arith.addf %2, %4 : vector<8x16xf32>
    %cst_5 = arith.constant 0.000000e+00 : f32
    %6 = vector.broadcast %cst_5 : f32 to vector<8x16xf32>
    %7 = arith.maximumf %5, %6 : vector<8x16xf32>
    %c0_6 = arith.constant 0 : index
    %c0_7 = arith.constant 0 : index
    %8 = vector.load %arg4[%c0_6, %c0_7] : memref<16x16xf32, #tpu.memory_space<vmem>>, vector<16x16xf32>
    %cst_8 = arith.constant dense<0.000000e+00> : vector<8x16xf32>
    %9 = tpu.matmul %7, %8, %cst_8 {dimension_numbers = #tpu.dot_dimension_numbers<[1], [0], [0], [1], [0, 0, 1, 1], [], []>} : vector<8x16xf32>, vector<16x16xf32>, vector<8x16xf32> -> vector<8x16xf32>
    %c0_9 = arith.constant 0 : index
    %c0_10 = arith.constant 0 : index
    %10 = vector.load %arg5[%c0_9, %c0_10] : memref<1x16xf32, #tpu.memory_space<vmem>>, vector<1x16xf32>
    %11 = vector.broadcast %10 : vector<1x16xf32> to vector<8x16xf32>
    %12 = arith.addf %9, %11 : vector<8x16xf32>
    %cst_11 = arith.constant 0.000000e+00 : f32
    %13 = vector.broadcast %cst_11 : f32 to vector<8x16xf32>
    %14 = arith.maximumf %12, %13 : vector<8x16xf32>
    %c0_12 = arith.constant 0 : index
    %c0_13 = arith.constant 0 : index
    %15 = vector.load %arg6[%c0_12, %c0_13] : memref<16x16xf32, #tpu.memory_space<vmem>>, vector<16x16xf32>
    %cst_14 = arith.constant dense<0.000000e+00> : vector<8x16xf32>
    %16 = tpu.matmul %14, %15, %cst_14 {dimension_numbers = #tpu.dot_dimension_numbers<[1], [0], [0], [1], [0, 0, 1, 1], [], []>} : vector<8x16xf32>, vector<16x16xf32>, vector<8x16xf32> -> vector<8x16xf32>
    %c0_15 = arith.constant 0 : index
    %c0_16 = arith.constant 0 : index
    %17 = vector.load %arg7[%c0_15, %c0_16] : memref<1x16xf32, #tpu.memory_space<vmem>>, vector<1x16xf32>
    %18 = vector.broadcast %17 : vector<1x16xf32> to vector<8x16xf32>
    %19 = arith.addf %16, %18 : vector<8x16xf32>
    %cst_17 = arith.constant 0.000000e+00 : f32
    %20 = vector.broadcast %cst_17 : f32 to vector<8x16xf32>
    %21 = arith.maximumf %19, %20 : vector<8x16xf32>
    %c0_18 = arith.constant 0 : index
    %c0_19 = arith.constant 0 : index
    %22 = vector.load %arg8[%c0_18, %c0_19] : memref<16x2xf32, #tpu.memory_space<vmem>>, vector<16x2xf32>
    %cst_20 = arith.constant dense<0.000000e+00> : vector<8x2xf32>
    %23 = tpu.matmul %21, %22, %cst_20 {dimension_numbers = #tpu.dot_dimension_numbers<[1], [0], [0], [1], [0, 0, 1, 1], [], []>} : vector<8x16xf32>, vector<16x2xf32>, vector<8x2xf32> -> vector<8x2xf32>
    %c0_21 = arith.constant 0 : index
    %c0_22 = arith.constant 0 : index
    %24 = vector.load %arg9[%c0_21, %c0_22] : memref<1x2xf32, #tpu.memory_space<vmem>>, vector<1x2xf32>
    %25 = vector.broadcast %24 : vector<1x2xf32> to vector<8x2xf32>
    %26 = arith.addf %23, %25 : vector<8x2xf32>
    %c0_23 = arith.constant 0 : index
    %c0_24 = arith.constant 0 : index
    %27 = vector.load %arg10[%c0_23, %c0_24] : memref<8x2xf32, #tpu.memory_space<vmem>>, vector<8x2xf32>
    tpu.vector_store %arg10[%c0_23, %c0_24], %26 {strides = array<i32>} : memref<8x2xf32, #tpu.memory_space<vmem>>, vector<8x2xf32>,
    return
  }
  func.func @transform_0(%arg0: i32) -> (i32, i32) {
    %c0_i32 = arith.constant 0 : i32
    %c0_i32_0 = arith.constant 0 : i32
    return %arg0, %c0_i32 : i32, i32
  }
  func.func @transform_1(%arg0: i32) -> (i32, i32) {
    %c0_i32 = arith.constant 0 : i32
    %c0_i32_0 = arith.constant 0 : i32
    %c0_i32_1 = arith.constant 0 : i32
    return %c0_i32, %c0_i32_0 : i32, i32
  }
  func.func @transform_2(%arg0: i32) -> (i32, i32) {
    %c0_i32 = arith.constant 0 : i32
    %c0_i32_0 = arith.constant 0 : i32
    %c0_i32_1 = arith.constant 0 : i32
    return %c0_i32, %c0_i32_0 : i32, i32
  }
  func.func @transform_3(%arg0: i32) -> (i32, i32) {
    %c0_i32 = arith.constant 0 : i32
    %c0_i32_0 = arith.constant 0 : i32
    %c0_i32_1 = arith.constant 0 : i32
    return %c0_i32, %c0_i32_0 : i32, i32
  }
  func.func @transform_4(%arg0: i32) -> (i32, i32) {
    %c0_i32 = arith.constant 0 : i32
    %c0_i32_0 = arith.constant 0 : i32
    %c0_i32_1 = arith.constant 0 : i32
    return %c0_i32, %c0_i32_0 : i32, i32
  }
  func.func @transform_5(%arg0: i32) -> (i32, i32) {
    %c0_i32 = arith.constant 0 : i32
    %c0_i32_0 = arith.constant 0 : i32
    %c0_i32_1 = arith.constant 0 : i32
    return %c0_i32, %c0_i32_0 : i32, i32
  }
  func.func @transform_6(%arg0: i32) -> (i32, i32) {
    %c0_i32 = arith.constant 0 : i32
    %c0_i32_0 = arith.constant 0 : i32
    %c0_i32_1 = arith.constant 0 : i32
    return %c0_i32, %c0_i32_0 : i32, i32
  }
  func.func @transform_7(%arg0: i32) -> (i32, i32) {
    %c0_i32 = arith.constant 0 : i32
    %c0_i32_0 = arith.constant 0 : i32
    %c0_i32_1 = arith.constant 0 : i32
    return %c0_i32, %c0_i32_0 : i32, i32
  }
  func.func @transform_8(%arg0: i32) -> (i32, i32) {
    %c0_i32 = arith.constant 0 : i32
    %c0_i32_0 = arith.constant 0 : i32
    %c0_i32_1 = arith.constant 0 : i32
    return %c0_i32, %c0_i32_0 : i32, i32
  }
  func.func @transform_9(%arg0: i32) -> (i32, i32) {
    %c0_i32 = arith.constant 0 : i32
    %c0_i32_0 = arith.constant 0 : i32
    return %arg0, %c0_i32 : i32, i32
  }
}

</mosaic_0001>

<bundles_post_ra>
// kernel: tpu_custom_call.1
= control target key start
LH: loop header
LB: loop body
LE: loop exit
PB: predicated region body
PF: predicated region fallthrough
CT: control target
= control target key end

     0   :  { %14 = vsyncpa [#allocation3], 0  ;;  %s387_s0 = inlined_call_operand.hbm [shape: f32[8,8], index: 0, kind: input, shape index: {}]   ;;  %s388_s1 = inlined_call_operand.hbm [shape: f32[8,16], index: 1, kind: input, shape index: {}]   ;;  %s389_s2 = inlined_call_operand.vmem [shape: f32[1,16], index: 2, kind: input, shape index: {}]   ;;  %s390_s3 = inlined_call_operand.vmem [shape: f32[16,16], index: 3, kind: input, shape index: {}]   ;;  %s391_s4 = inlined_call_operand.vmem [shape: f32[1,16], index: 4, kind: input, shape index: {}]   ;;  %s392_s5 = inlined_call_operand.hbm [shape: f32[16,16], index: 5, kind: input, shape index: {}]   ;;  %s393_s6 = inlined_call_operand.vmem [shape: f32[1,16], index: 6, kind: input, shape index: {}]   ;;  %s394_s7 = inlined_call_operand.vmem [shape: f32[16,2], index: 7, kind: input, shape index: {}]   ;;  %s395_s8 = inlined_call_operand.vmem [shape: f32[1,2], index: 8, kind: input, shape index: {}]   ;;  %s396_s9 = inlined_call_operand.vmem [shape: f32[8,2], index: 9, kind: output, shape index: {}]  }
   0x1   :  { %15 = vsyncpa [#allocation5], 0  ;;  %s32_s11 = sshll.u32 %s388_s1, 4  ;;  %s293_s12 = smov [#allocation4]   ;;  %s33_s11 = int_to_ptr.hbm [resolvable:$true] %s32_s11 }
   0x2   :  { %s34_s13 = sshll.u32 %s293_s12, 4  ;;  %s21_s16 = sshll.u32 %s387_s0, 4  ;;  %s35_s13 = int_to_ptr.vmem [resolvable:$true] %s34_s13  ;;  %s22_s16 = int_to_ptr.hbm [resolvable:$true] %s21_s16 }
   0x3   :  { %37 = dma.hbm_to_vmem [thread:$0]  %s33_s11, 128, %s35_s13, [#allocation5]  }
   0x4   :  { %s294_s17 = smov [#allocation2]   ;;  %s48_s21 = sshll.u32 %s392_s5, 4  ;;  %s49_s21 = int_to_ptr.hbm [resolvable:$true] %s48_s21 }
   0x5   :  { %s23_s18 = sshll.u32 %s294_s17, 4  ;;  %s295_s1 = smov [#allocation6]   ;;  %s24_s18 = int_to_ptr.vmem [resolvable:$true] %s23_s18 }
   0x6   :  { %26 = dma.hbm_to_vmem [thread:$0]  %s22_s16, 128, %s24_s18, [#allocation3]  }
   0x7   :  { %s50_s22 = sshll.u32 %s295_s1, 4  ;;  %s296_s23 = smov 128   ;;  %s51_s22 = int_to_ptr.vmem [resolvable:$true] %s50_s22 }
   0x8   :  { %s297_s24 = smov 8  }
   0x9   :  { %56 = dma.hbm_to_vmem [thread:$0]  %s49_s21, 256, %s51_s22, [#allocation5], %s296_s23, %s296_s23, %s297_s24  }
   0xa   :  { %289 = dma.done.wait [#allocation3], 128  }
   0xb   :  { %290 = vsyncadd [#allocation3], 4294967168 }
   0xc   :  { %291 = dma.done.wait [#allocation5], 384  }
   0xd   :  { %292 = vsyncadd [#allocation5], 4294966912  ;;  %vm81_vm0 = vcmask 64512   ;;  %v76_v0 = vld [vmem:[#allocation4] sm:$0xff]  ;;  %v75_v1 = vld [vmem:[#allocation2] sm:$0xff]  ;;  %vm112_vm1 = vcmask 130048  }
   0xe   :  { %100 = vmatpush.msra.mxu0 %v76_v0  ;;  %v107_v2 = vld [vmem:[%s390_s3 + $0x8] sm:$0xff]  ;;  %v106_v3 = vld [vmem:[%s390_s3] sm:$0xff]  ;;  %v138_v8 = vld [vmem:[#allocation6 + $0x8] sm:$0xff]  ;;  %vm196_vm2 = vcmask 15360  }
   0xf   :  { %204 = vmatmul.msk.f32.vlgmr.msra.gmra.mxu0 %vm81_vm0, %v75_v1  ;;  %130 = vmatpush.msra.mxu1 %v107_v2  ;;  %v213_v4 = vld [vmem:[%s389_s2] ss:$0 sm:$0xff]  ;;  %v137_v9 = vld [vmem:[#allocation6] sm:$0xff]  ;;  %v168_v14 = vld [vmem:[%s394_s7 + $0x8] sm:$0xff] }
  0x10   :  { %160 = vmatpush.msra.mxu2 %v138_v8  ;;  %v214_v10 = vld [vmem:[%s391_s4] ss:$0 sm:$0xff]  ;;  %190 = vmatpush.msra.mxu3 %v168_v14 }
  0x11   :  { %131 = vmatpush.msra.mxu1 %v106_v3  ;;  %v167_v15 = vld [vmem:[%s394_s7] sm:$0xff] }
  0x12   :  { %161 = vmatpush.msra.mxu2 %v137_v9  ;;  %191 = vmatpush.msra.mxu3 %v167_v15  ;;  %v215_v16 = vld [vmem:[%s393_s6] ss:$0 sm:$0xff] }
  0x13   :  { %v216_v20 = vld [vmem:[%s395_s8] ss:$0 sm:$0xff] }
  0x8c   :  { %v102_v5 = vpop.f32.mrf.mxu0 }
  0x8d   :  { %v103_v6 = vadd.f32 %v213_v4, %v102_v5 }
  0x8f   :  { %v105_v7 = vmax.f32 %v103_v6, 0.0 }
  0x91   :  { %205 = vmatmul.msk.f32.vlgmr.msra.gmra.mxu1 %vm112_vm1, %v105_v7 }
 0x10e   :  { %v133_v11 = vpop.f32.mrf.mxu1 }
 0x10f   :  { %v134_v12 = vadd.f32 %v214_v10, %v133_v11 }
 0x111   :  { %v136_v13 = vmax.f32 %v134_v12, 0.0 }
 0x113   :  { %206 = vmatmul.msk.f32.vlgmr.msra.gmra.mxu2 %vm112_vm1, %v136_v13 }
 0x196   :  { %v163_v17 = vpop.f32.mrf.mxu2 }
 0x197   :  { %v164_v18 = vadd.f32 %v215_v16, %v163_v17 }
 0x199   :  { %v166_v19 = vmax.f32 %v164_v18, 0.0 }
 0x19b   :  { %207 = vmatmul.msk.f32.vlgmr.msra.gmra.mxu3 %vm112_vm1, %v166_v19 }
 0x21e   :  { %v193_v21 = vpop.f32.mrf.mxu3 }
 0x21f   :  { %v194_v22 = vadd.f32 %v216_v20, %v193_v21 }
 0x221   :  { %197 = vst.msk [vmem:[%s396_s9] sm:$0xff] %vm196_vm2, %v194_v22 }
 0x222   :  { %202 = vsyncpa [#allocation3], 1 }
 0x223   :  { %203 = vsyncpa [#allocation5], 1 }

</bundles_post_ra>
